<compile_context>
chip_gen: v7x
topology: tpu7x:2x2x1
jax: 0.10.0
libtpu: 0.0.40
codegen_flags: <defaults>
</compile_context>

<pallas_src>
import jax
import jax.numpy as jnp
from jax.experimental import pallas as pl
from jax.experimental.pallas import tpu as pltpu

_LANE = 128
_SUBLANE = 8


def _classifier_head_kernel(feat_ref, w1_ref, b1_ref, w2_ref, b2_ref,
                            out_ref, acc_ref):
    k = pl.program_id(1)

    @pl.when(k == 0)
    def _():
        acc_ref[...] = jnp.zeros_like(acc_ref)

    # Partial pooling sum over this reduction block (lane-dense layout).
    x = feat_ref[...].astype(jnp.float32)           # (block_b, block_k, LANE)
    acc_ref[...] += jnp.sum(x, axis=1)              # (block_b, LANE)

    @pl.when(k == pl.num_programs(1) - 1)
    def _():
        # mean divide + BN scale already folded into w1; BN shift + b1 folded into b1.
        h = jnp.dot(acc_ref[...], w1_ref[...],
                    preferred_element_type=jnp.float32)          # (block_b, H)
        h = jnp.maximum(h + b1_ref[...], 0.0)                    # bias + BN + ReLU
        o = jnp.dot(h, w2_ref[...], preferred_element_type=jnp.float32)
        out_ref[...] = (o + b2_ref[...]).astype(out_ref.dtype)   # (block_b, NC_pad)


def classifier_head(feat, w1, b1, bn_gamma, bn_beta, bn_mean, bn_var, w2, b2,
                    eps=1e-5, block_b=None, feat_block_budget_bytes=8 * 2**20):
    """feat: (B, T, J, C). Returns (B, num_classes) float32 (eval-mode forward)."""
    B, T, J, C = feat.shape
    H = w1.shape[1]
    NC = w2.shape[1]
    TJ = T * J

    # ---- lane-dense feat layout: (B, TJ//G, G*C) with G*C == 128 when possible ----
    if C < _LANE and _LANE % C == 0 and TJ % (_LANE // C) == 0:
        G = _LANE // C
    else:
        G = 1
    lane = G * C
    k_len = TJ // G
    feat_ld = feat.reshape(B, k_len, lane)

    # ---- fold eval BatchNorm + mean divide into FC1 params (wrapper-side glue) ----
    scale = bn_gamma / jnp.sqrt(bn_var + eps)                    # (H,)
    w1_f = (w1 * scale[None, :]) / float(TJ)                     # (C, H)
    w1_rep = jnp.tile(w1_f, (G, 1)).astype(jnp.float32)          # (G*C, H): lane-group fold on MXU
    b1_f = ((b1 - bn_mean) * scale + bn_beta).reshape(1, H).astype(jnp.float32)

    # ---- lane-dense (padded) output / second FC ----
    nc_pad = max(_LANE, ((NC + _LANE - 1) // _LANE) * _LANE)
    w2_p = jnp.zeros((H, nc_pad), jnp.float32).at[:, :NC].set(w2)
    b2_p = jnp.zeros((1, nc_pad), jnp.float32).at[0, :NC].set(b2)

    # ---- block sizes ----
    if block_b is None:
        if B % _SUBLANE == 0:
            block_b = min(B, 256)
            while B % block_b != 0:
                block_b //= 2
        else:
            block_b = B           # small / ragged batch: single full-B block
    nb = B // block_b

    bytes_per_row = block_b * lane * feat_ld.dtype.itemsize
    max_k = max(1, feat_block_budget_bytes // (2 * bytes_per_row))
    if k_len <= max_k:
        block_k = k_len
    else:
        block_k = min((max_k // _SUBLANE) * _SUBLANE, k_len)
        while block_k >= _SUBLANE and k_len % block_k != 0:
            block_k -= _SUBLANE
        if block_k < _SUBLANE:
            block_k = k_len
    nk = k_len // block_k

    grid = (nb, nk)

    feat_spec = pl.BlockSpec((block_b, block_k, lane), lambda i, k: (i, k, 0))
    w1_spec = pl.BlockSpec((lane, H), lambda i, k: (0, 0))
    b1_spec = pl.BlockSpec((1, H), lambda i, k: (0, 0))
    w2_spec = pl.BlockSpec((H, nc_pad), lambda i, k: (0, 0))
    b2_spec = pl.BlockSpec((1, nc_pad), lambda i, k: (0, 0))
    out_spec = pl.BlockSpec((block_b, nc_pad), lambda i, k: (i, 0))

    # Explicit VMEM budget (double-buffered feat stream + params + acc + out).
    vmem_need = (2 * block_b * block_k * lane * feat_ld.dtype.itemsize
                 + 4 * (w1_rep.size + b1_f.size + w2_p.size + b2_p.size)
                 + 2 * block_b * nc_pad * 4
                 + block_b * lane * 4)
    vmem_limit = int(min(100 * 2**20, max(4 * 2**20, 2 * vmem_need)))

    cost = pl.CostEstimate(
        flops=B * TJ * C + 2 * B * lane * H + 2 * B * H * nc_pad,
        transcendentals=0,
        bytes_accessed=(feat_ld.size * feat_ld.dtype.itemsize
                        + 4 * (w1_rep.size + b1_f.size + w2_p.size + b2_p.size)
                        + 4 * B * nc_pad),
    )

    out_padded = pl.pallas_call(
        _classifier_head_kernel,
        out_shape=jax.ShapeDtypeStruct((B, nc_pad), jnp.float32),
        grid_spec=pltpu.PrefetchScalarGridSpec(
            num_scalar_prefetch=0,
            grid=grid,
            in_specs=[feat_spec, w1_spec, b1_spec, w2_spec, b2_spec],
            out_specs=out_spec,
            scratch_shapes=[pltpu.VMEM((block_b, lane), jnp.float32)],
        ),
        compiler_params=pltpu.CompilerParams(
            dimension_semantics=("parallel", "arbitrary"),
            vmem_limit_bytes=vmem_limit,
        ),
        cost_estimate=cost,
    )(feat_ld, w1_rep, b1_f, w2_p, b2_p)

    return out_padded[:, :NC]


if __name__ == "__main__":
    # Small shapes consistent with the module:
    #   backbone='motionbert', merge_joints=True, dim_rep=32,
    #   classifier_hidden_dims=[32], num_classes=3, num_joints=17
    B, T, J, C = 2, 8, 17, 32
    H, NUM_CLASSES = 32, 3

    key = jax.random.PRNGKey(0)
    k_feat, k_w1, k_b1, k_g, k_bta, k_w2, k_b2 = jax.random.split(key, 7)

    feat = jax.random.normal(k_feat, (B, T, J, C), dtype=jnp.float32)

    # Deterministic parameter init (Linear weights stored as (in, out)).
    w1 = jax.random.normal(k_w1, (C, H), dtype=jnp.float32) * 0.05
    b1 = jax.random.normal(k_b1, (H,), dtype=jnp.float32) * 0.05
    bn_gamma = 1.0 + 0.1 * jax.random.normal(k_g, (H,), dtype=jnp.float32)
    bn_beta = 0.1 * jax.random.normal(k_bta, (H,), dtype=jnp.float32)
    bn_mean = jnp.zeros((H,), dtype=jnp.float32)   # running stats at init
    bn_var = jnp.ones((H,), dtype=jnp.float32)
    w2 = jax.random.normal(k_w2, (H, NUM_CLASSES), dtype=jnp.float32) * 0.05
    b2 = jax.random.normal(k_b2, (NUM_CLASSES,), dtype=jnp.float32) * 0.05

    logits = classifier_head(feat, w1, b1, bn_gamma, bn_beta, bn_mean, bn_var,
                             w2, b2)
    jax.block_until_ready(logits)

    # Sanity check against a pure-JAX reference of the same (eval-mode) math.
    pooled_ref = feat.reshape(B, T * J, C).mean(axis=1)
    h_ref = pooled_ref @ w1 + b1
    h_ref = (h_ref - bn_mean) / jnp.sqrt(bn_var + 1e-5) * bn_gamma + bn_beta
    h_ref = jnp.maximum(h_ref, 0.0)
    ref = h_ref @ w2 + b2
    assert logits.shape == (B, NUM_CLASSES)
    assert jnp.allclose(logits, ref, atol=1e-4, rtol=1e-4), "mismatch vs reference"

    print("KERNEL_OK")
</pallas_src>

<mosaic_0001>
module attributes {stable_mosaic.version = 11 : i64} {
  func.func @_classifier_head_kernel(%arg0: i32, %arg1: i32, %arg2: memref<2x34x128xf32, #tpu.memory_space<vmem>>, %arg3: memref<128x32xf32, #tpu.memory_space<vmem>>, %arg4: memref<1x32xf32, #tpu.memory_space<vmem>>, %arg5: memref<32x128xf32, #tpu.memory_space<vmem>>, %arg6: memref<1x128xf32, #tpu.memory_space<vmem>>, %arg7: memref<2x128xf32, #tpu.memory_space<vmem>>, %arg8: memref<2x128xf32, #tpu.memory_space<vmem>>) attributes {dimension_semantics = [#tpu.dimension_semantics<parallel>, #tpu.dimension_semantics<arbitrary>], iteration_bounds = array<i64: 1, 1>, scalar_prefetch = 0 : i64, scratch_operands = 1 : i64, tpu.core_type = #tpu.core_type<tc>, window_params = [{transform_indices = @transform_0, window_bounds = array<i64: 2, 34, 128>}, {pipeline_mode = #tpu.pipeline_mode<synchronous>, transform_indices = @transform_1, window_bounds = array<i64: 128, 32>}, {pipeline_mode = #tpu.pipeline_mode<synchronous>, transform_indices = @transform_2, window_bounds = array<i64: 1, 32>}, {pipeline_mode = #tpu.pipeline_mode<synchronous>, transform_indices = @transform_3, window_bounds = array<i64: 32, 128>}, {pipeline_mode = #tpu.pipeline_mode<synchronous>, transform_indices = @transform_4, window_bounds = array<i64: 1, 128>}, {transform_indices = @transform_5, window_bounds = array<i64: 2, 128>}]} {
    %c0_i32 = arith.constant 0 : i32
    %0 = arith.cmpi eq, %arg1, %c0_i32 : i32
    %1 = arith.extui %0 : i1 to i32
    %c0_i32_0 = arith.constant 0 : i32
    %2 = arith.cmpi ne, %1, %c0_i32_0 : i32
    scf.if %2 {
      %cst_9 = arith.constant 0.000000e+00 : f32
      %11 = vector.broadcast %cst_9 : f32 to vector<2x128xf32>
      %c0_10 = arith.constant 0 : index
      %c0_11 = arith.constant 0 : index
      %12 = vector.load %arg8[%c0_10, %c0_11] : memref<2x128xf32, #tpu.memory_space<vmem>>, vector<2x128xf32>
      tpu.vector_store %arg8[%c0_10, %c0_11], %11 {strides = array<i32>} : memref<2x128xf32, #tpu.memory_space<vmem>>, vector<2x128xf32>,
    } else {
    }
    %c0 = arith.constant 0 : index
    %c0_1 = arith.constant 0 : index
    %c0_2 = arith.constant 0 : index
    %3 = vector.load %arg2[%c0, %c0_1, %c0_2] : memref<2x34x128xf32, #tpu.memory_space<vmem>>, vector<2x34x128xf32>
    %c0_3 = arith.constant 0 : index
    %c0_4 = arith.constant 0 : index
    %4 = vector.load %arg8[%c0_3, %c0_4] : memref<2x128xf32, #tpu.memory_space<vmem>>, vector<2x128xf32>
    %cst = arith.constant dense<0.000000e+00> : vector<2x128xf32>
    %5 = vector.multi_reduction <add>, %3, %cst [1] : vector<2x34x128xf32> to vector<2x128xf32>
    %6 = arith.addf %4, %5 : vector<2x128xf32>
    %c0_5 = arith.constant 0 : index
    %c0_6 = arith.constant 0 : index
    %7 = vector.load %arg8[%c0_5, %c0_6] : memref<2x128xf32, #tpu.memory_space<vmem>>, vector<2x128xf32>
    tpu.vector_store %arg8[%c0_5, %c0_6], %6 {strides = array<i32>} : memref<2x128xf32, #tpu.memory_space<vmem>>, vector<2x128xf32>,
    %c0_i32_7 = arith.constant 0 : i32
    %8 = arith.cmpi eq, %arg1, %c0_i32_7 : i32
    %9 = arith.extui %8 : i1 to i32
    %c0_i32_8 = arith.constant 0 : i32
    %10 = arith.cmpi ne, %9, %c0_i32_8 : i32
    scf.if %10 {
      %c0_9 = arith.constant 0 : index
      %c0_10 = arith.constant 0 : index
      %11 = vector.load %arg8[%c0_9, %c0_10] : memref<2x128xf32, #tpu.memory_space<vmem>>, vector<2x128xf32>
      %c0_11 = arith.constant 0 : index
      %c0_12 = arith.constant 0 : index
      %12 = vector.load %arg3[%c0_11, %c0_12] : memref<128x32xf32, #tpu.memory_space<vmem>>, vector<128x32xf32>
      %cst_13 = arith.constant dense<0.000000e+00> : vector<2x32xf32>
      %13 = tpu.matmul %11, %12, %cst_13 {dimension_numbers = #tpu.dot_dimension_numbers<[1], [0], [0], [1], [0, 0, 1, 1], [], []>} : vector<2x128xf32>, vector<128x32xf32>, vector<2x32xf32> -> vector<2x32xf32>
      %c0_14 = arith.constant 0 : index
      %c0_15 = arith.constant 0 : index
      %14 = vector.load %arg4[%c0_14, %c0_15] : memref<1x32xf32, #tpu.memory_space<vmem>>, vector<1x32xf32>
      %15 = vector.broadcast %14 : vector<1x32xf32> to vector<2x32xf32>
      %16 = arith.addf %13, %15 : vector<2x32xf32>
      %cst_16 = arith.constant 0.000000e+00 : f32
      %17 = vector.broadcast %cst_16 : f32 to vector<2x32xf32>
      %18 = arith.maximumf %16, %17 : vector<2x32xf32>
      %c0_17 = arith.constant 0 : index
      %c0_18 = arith.constant 0 : index
      %19 = vector.load %arg5[%c0_17, %c0_18] : memref<32x128xf32, #tpu.memory_space<vmem>>, vector<32x128xf32>
      %cst_19 = arith.constant dense<0.000000e+00> : vector<2x128xf32>
      %20 = tpu.matmul %18, %19, %cst_19 {dimension_numbers = #tpu.dot_dimension_numbers<[1], [0], [0], [1], [0, 0, 1, 1], [], []>} : vector<2x32xf32>, vector<32x128xf32>, vector<2x128xf32> -> vector<2x128xf32>
      %c0_20 = arith.constant 0 : index
      %c0_21 = arith.constant 0 : index
      %21 = vector.load %arg6[%c0_20, %c0_21] : memref<1x128xf32, #tpu.memory_space<vmem>>, vector<1x128xf32>
      %22 = vector.broadcast %21 : vector<1x128xf32> to vector<2x128xf32>
      %23 = arith.addf %20, %22 : vector<2x128xf32>
      %c0_22 = arith.constant 0 : index
      %c0_23 = arith.constant 0 : index
      %24 = vector.load %arg7[%c0_22, %c0_23] : memref<2x128xf32, #tpu.memory_space<vmem>>, vector<2x128xf32>
      tpu.vector_store %arg7[%c0_22, %c0_23], %23 {strides = array<i32>} : memref<2x128xf32, #tpu.memory_space<vmem>>, vector<2x128xf32>,
    } else {
    }
    return
  }
  func.func @transform_0(%arg0: i32, %arg1: i32) -> (i32, i32, i32) {
    %c0_i32 = arith.constant 0 : i32
    %c0_i32_0 = arith.constant 0 : i32
    return %arg0, %arg1, %c0_i32 : i32, i32, i32
  }
  func.func @transform_1(%arg0: i32, %arg1: i32) -> (i32, i32) {
    %c0_i32 = arith.constant 0 : i32
    %c0_i32_0 = arith.constant 0 : i32
    %c0_i32_1 = arith.constant 0 : i32
    return %c0_i32, %c0_i32_0 : i32, i32
  }
  func.func @transform_2(%arg0: i32, %arg1: i32) -> (i32, i32) {
    %c0_i32 = arith.constant 0 : i32
    %c0_i32_0 = arith.constant 0 : i32
    %c0_i32_1 = arith.constant 0 : i32
    return %c0_i32, %c0_i32_0 : i32, i32
  }
  func.func @transform_3(%arg0: i32, %arg1: i32) -> (i32, i32) {
    %c0_i32 = arith.constant 0 : i32
    %c0_i32_0 = arith.constant 0 : i32
    %c0_i32_1 = arith.constant 0 : i32
    return %c0_i32, %c0_i32_0 : i32, i32
  }
  func.func @transform_4(%arg0: i32, %arg1: i32) -> (i32, i32) {
    %c0_i32 = arith.constant 0 : i32
    %c0_i32_0 = arith.constant 0 : i32
    %c0_i32_1 = arith.constant 0 : i32
    return %c0_i32, %c0_i32_0 : i32, i32
  }
  func.func @transform_5(%arg0: i32, %arg1: i32) -> (i32, i32) {
    %c0_i32 = arith.constant 0 : i32
    %c0_i32_0 = arith.constant 0 : i32
    return %arg0, %c0_i32 : i32, i32
  }
}

</mosaic_0001>

<bundles_post_ra>
// kernel: tpu_custom_call.1
= control target key start
LH: loop header
LB: loop body
LE: loop exit
PB: predicated region body
PF: predicated region fallthrough
CT: control target
= control target key end

     0   :  { %v394_v3 = vmov 0.0|0.0   ;;  %v395_v6 = vmov 0.0   ;;  %vm396_vm0 = vmmov 0   ;;  %vm40_vm1 = vcmask 1041408   ;;  %s548_s0 = inlined_call_operand.vmem [shape: f32[2,34,128], index: 0, kind: input, shape index: {}]   ;;  %s549_s1 = inlined_call_operand.vmem [shape: f32[128,32], index: 1, kind: input, shape index: {}]   ;;  %s550_s2 = inlined_call_operand.vmem [shape: f32[1,32], index: 2, kind: input, shape index: {}]   ;;  %s551_s3 = inlined_call_operand.vmem [shape: f32[32,128], index: 3, kind: input, shape index: {}]   ;;  %s552_s4 = inlined_call_operand.vmem [shape: f32[1,128], index: 4, kind: input, shape index: {}]   ;;  %s553_s5 = inlined_call_operand.hbm [shape: f32[2,128], index: 5, kind: output, shape index: {}]  }
   0x1   :  { %v71_v0 = vld [vmem:[%s549_s1] sm:$0xff]  ;;  %v72_v1 = vld [vmem:[%s549_s1 + $0x8] sm:$0xff]  ;;  %v73_v2 = vld [vmem:[%s549_s1 + $0x10] sm:$0xff]  ;;  %336 = vmatprep.subr.bf16.mxu0 %v394_v3  ;;  %25 = vst [vmem:[#allocation2] sm:$0x3] %v395_v6  ;;  %360 = vmatprep.subr.bf16.mxu1 %v394_v3 }
   0x2   :  { %v337_v4 = vpack.c.bf16 %v72_v1, %v71_v0  ;;  %v74_v5 = vld [vmem:[%s549_s1 + $0x18] sm:$0xff]  ;;  %322 = vmatprep.mubr.msk.f32.mxu0 %vm396_vm0, %v395_v6  ;;  %333 = vmatprep.mubr.msk.f32.mxu1 %vm396_vm0, %v395_v6  ;;  %v75_v8 = vld [vmem:[%s549_s1 + $0x20] sm:$0xff]  ;;  %v76_v9 = vld [vmem:[%s549_s1 + $0x28] sm:$0xff] }
   0x3   :  { %v340_v7 = vpack.c.bf16 %v74_v5, %v73_v2  ;;  %v26_v10 = vld [vmem:[%s548_s0] sm:$0xff]  ;;  %v27_v11 = vld [vmem:[%s548_s0 + $0x8] sm:$0xff]  ;;  %v28_v12 = vld [vmem:[%s548_s0 + $0x10] sm:$0xff]  ;;  %v343_v16 = vpack.c.bf16 %v76_v9, %v75_v8 }
   0x4   :  { %338 = vmatpush3.bf16.msra.mxu0 %v337_v4  ;;  %v29_v13 = vld [vmem:[%s548_s0 + $0x18] sm:$0xff]  ;;  %v30_v14 = vld [vmem:[%s548_s0 + $0x20] sm:$0x3]  ;;  %v37_v15 = vadd.f32 %v27_v11, %v26_v10  ;;  %v31_v17 = vld [vmem:[%s548_s0 + $0x28] sm:$0xff] }
   0x5   :  { %339 = vmatprep.subr.bf16.mxu0 %v394_v3  ;;  %v32_v18 = vld [vmem:[%s548_s0 + $0x30] sm:$0xff]  ;;  %v33_v19 = vld [vmem:[%s548_s0 + $0x38] sm:$0xff]  ;;  %v35_v22 = vld [vmem:[%s548_s0 + $0x48] sm:$0x3]  ;;  %v41_v26 = vsel %vm40_vm1, %v30_v14, 0.0 }
   0x6   :  { %v77_v20 = vld [vmem:[%s549_s1 + $0x30] sm:$0xff]  ;;  %v78_v21 = vld [vmem:[%s549_s1 + $0x38] sm:$0xff]  ;;  %v38_v23 = vadd.f32 %v37_v15, %v28_v12  ;;  %v49_v24 = vadd.f32 %v32_v18, %v31_v17  ;;  %v34_v25 = vld [vmem:[%s548_s0 + $0x40] sm:$0xff] }
   0x7   :  { %v165_v27 = vld [vmem:[%s551_s3] sm:$0xff]  ;;  %v166_v28 = vld [vmem:[%s551_s3 + $0x8] sm:$0xff] }
   0x8   :  { %341 = vmatpush3.bf16.msra.mxu0 %v340_v7  ;;  %v39_v29 = vadd.f32 %v38_v23, %v29_v13  ;;  %v50_v30 = vadd.f32 %v49_v24, %v33_v19  ;;  %v361_v31 = vpack.c.bf16 %v166_v28, %v165_v27 }
   0x9   :  { %342 = vmatprep.subr.bf16.mxu0 %v394_v3 }
   0xa   :  { %10 = vsyncpa [#allocation4], 0  ;;  %v346_v32 = vpack.c.bf16 %v78_v21, %v77_v20  ;;  %v52_v33 = vsel %vm40_vm1, %v35_v22, 0.0  ;;  %v79_v34 = vld [vmem:[%s549_s1 + $0x40] sm:$0xff]  ;;  %v80_v35 = vld [vmem:[%s549_s1 + $0x48] sm:$0xff]  ;;  %v42_v36 = vadd.f32 %v41_v26, %v39_v29  ;;  %v51_v37 = vadd.f32 %v50_v30, %v34_v25  ;;  %362 = vmatpush3.bf16.msra.mxu1 %v361_v31  ;;  %s397_s30 = smov [#allocation3]  }
   0xb   :  { %363 = vmatprep.subr.bf16.mxu1 %v394_v3  ;;  %v349_v40 = vpack.c.bf16 %v80_v35, %v79_v34  ;;  %v81_v41 = vld [vmem:[%s549_s1 + $0x50] sm:$0xff]  ;;  %v82_v42 = vld [vmem:[%s549_s1 + $0x58] sm:$0xff]  ;;  %v83_v48 = vld [vmem:[%s549_s1 + $0x60] sm:$0xff]  ;;  %vm62_vm2 = vcmask 1041409   ;;  %vm176_vm3 = vcmask 261120   ;;  %s257_s6 = sshll.u32 %s397_s30, 4  ;;  %s258_s6 = int_to_ptr.vmem [resolvable:$true] %s257_s6 }
   0xc   :  { %344 = vmatpush3.bf16.msra.mxu0 %v343_v16  ;;  %v43_v38 = vrot.slane %v42_v36, 4  ;;  %v53_v39 = vadd.f32 %v52_v33, %v51_v37  ;;  %v352_v47 = vpack.c.bf16 %v82_v42, %v81_v41  ;;  %v84_v49 = vld [vmem:[%s549_s1 + $0x68] sm:$0xff]  ;;  %v85_v55 = vld [vmem:[%s549_s1 + $0x70] sm:$0xff]  ;;  %v86_v56 = vld [vmem:[%s549_s1 + $0x78] sm:$0xff]  ;;  %p375_p1 = scmp.lt.s32.totalorder %s258_s6, %s258_s6 }
   0xd   :  { %345 = vmatprep.subr.bf16.mxu0 %v394_v3  ;;  %v355_v54 = vpack.c.bf16 %v84_v49, %v83_v48  ;;  %v36_v59 = vld [vmem:[#allocation2] sm:$0x3]  ;;  %v358_v61 = vpack.c.bf16 %v86_v56, %v85_v55  ;;  %v168_v2 = vld [vmem:[%s551_s3 + $0x18] sm:$0xff]  ;;  %v266_v9 = vld [vmem:[%s552_s4] ss:$0 sm:$0xff] }
   0xe   :  { %v44_v43 = vadd.f32 %v43_v38, %v42_v36  ;;  %v54_v44 = vrot.slane %v53_v39, 4  ;;  %v167_v1 = vld [vmem:[%s551_s3 + $0x10] sm:$0xff]  ;;  %s370_s3 = scalar_lea.vmem %s258_s6, 32 }
   0xf   :  { %v364_v4 = vpack.c.bf16 %v168_v2, %v167_v1  ;;  %p371_p0 = scmp.ne.s32.totalorder %s258_s6, %s370_s3  ;;  %p376_p2 = scmp.lt.s32.totalorder %s370_s3, %s370_s3 }
  0x10   :  { %347 = vmatpush3.bf16.msra.mxu0 %v346_v32  ;;  %v45_v45 = vrot.slane %v44_v43, 2  ;;  %v55_v46 = vadd.f32 %v54_v44, %v53_v39 }
  0x11   :  { %348 = vmatprep.subr.bf16.mxu0 %v394_v3  ;;  %365 = vmatpush3.bf16.msra.mxu1 %v364_v4  ;;  %p377_p3 = por %p376_p2, %p375_p1 }
  0x12   :  { %v46_v50 = vadd.f32 %v45_v45, %v44_v43  ;;  %v56_v51 = vrot.slane %v55_v46, 2 }
  0x13   :  { %p378_p4 = pnand %p377_p3, %p371_p0 }
  0x14   :  { %350 = vmatpush3.bf16.msra.mxu0 %v349_v40  ;;  %v47_v52 = vrot.slane %v46_v50, 1  ;;  %v57_v53 = vadd.f32 %v56_v51, %v55_v46 }
  0x15   :  { %351 = vmatprep.subr.bf16.mxu0 %v394_v3 }
  0x16   :  { %v48_v57 = vadd.f32 %v47_v52, %v46_v50  ;;  %v58_v58 = vrot.slane %v57_v53, 1 }
  0x18   :  { %353 = vmatpush3.bf16.msra.mxu0 %v352_v47  ;;  %v59_v60 = vadd.f32 %v58_v58, %v57_v53 }
  0x19   :  { %354 = vmatprep.subr.bf16.mxu0 %v394_v3 }
  0x1a   :  { %v63_v62 = vsel %vm62_vm2, %v59_v60, %v48_v57 }
  0x1b   :  { %v65_v63 = vadd.f32 %v63_v62, %v36_v59 }
  0x1c   :  { %356 = vmatpush3.bf16.msra.mxu0 %v355_v54 }
  0x1d   :  { %357 = vmatprep.subr.bf16.mxu0 %v394_v3  ;;  %66 = vst [vmem:[#allocation2] sm:$0x3] %v65_v63  ;;  %v265_v3 = vld [vmem:[%s550_s2] ss:$0 sm:$0xff] }
  0x20   :  { %359 = vmatpush3.bf16.msra.mxu0 %v358_v61 }
  0x24   :  { %v70_v0 = vld [vmem:[#allocation2] sm:$0x3] }
  0x25   :  { %323 = vmatmul.mubr.f32.vlgmr.msra.gmra.mrb[0].mxu0 %v70_v0 }
  0xf8   :  { %v160_v5 = vpop.f32.mrb[0].mxu0 }
  0xf9   :  { %v161_v6 = vadd.f32 %v265_v3, %v160_v5  ;;  %v324_v7 = vpop.f32.mrb[1].mxu0 }
  0xfb   :  { %v164_v8 = vmax.f32 %v161_v6, 0.0 }
  0xfd   :  { %334 = vmatmul.mubr.msk.f32.vlgmr.msra.gmra.mrb[0].mxu1 %vm176_vm3, %v164_v8 }
 0x1d0   :  { %v246_v10 = vpop.f32.mrb[0].mxu1 }
 0x1d1   :  { %v247_v11 = vadd.f32 %v266_v9, %v246_v10  ;;  %v335_v12 = vpop.f32.mrb[1].mxu1 }
 0x1d3   :  { %250 = vst [vmem:[#allocation3] sm:$0x3] %v247_v11 }
 0x1d4   :  { %381 = shalt.err (!%p378_p4)
}
 0x1d5   :  { %s382_s0 = scalar_lea.hbm %s553_s5, 32 }
 0x1d6   :  { %p383_p5 = scmp.ne.s32.totalorder %s553_s5, %s382_s0  ;;  %p386_p6 = scmp.lt.u32.totalorder %s382_s0, %s553_s5 }
 0x1d8   :  { %p388_p7 = pnand %p386_p6, %p383_p5 }
 0x1da   :  { %391 = shalt.err (!%p388_p7)
}
 0x1db   :  { %260 = dma.vmem_to_hbm [thread:$0]  %s258_s6, 32, %s553_s5, [#allocation4]  }
 0x1dc   :  { %392 = dma.done.wait [#allocation4], 32  }
 0x1dd   :  { %393 = vsyncadd [#allocation4], 4294967264 }
 0x1de   :  { %264 = vsyncpa [#allocation4], 1 }

</bundles_post_ra>
